<compile_context>
chip_gen: v7x
topology: tpu7x:2x2x1
jax: 0.10.0
libtpu: 0.0.40
codegen_flags: <defaults>
</compile_context>

<pallas_src>
import functools

import jax
import jax.numpy as jnp
from jax import lax
from jax.experimental import pallas as pl
from jax.experimental.pallas import tpu as pltpu

_SENTINEL = (1 << 31) - 1  # int32 max: marks invalid / already-selected slots


def _target_gen_kernel(overlap_threshold, num_targets,
                       ovl2d_ref, rnd2d_ref,        # (8, K) VMEM: overlaps, random bits
                       ovl_smem_ref, idx_smem_ref,  # (N,), (2N,) SMEM: scalar gather tables
                       ref_out, src_out, ovl_out, cnt_out,  # (M,),(M,),(M,),(1,) SMEM outputs
                       kmin_smem):                  # (1,) SMEM scratch (vector->scalar hop)
    M = num_targets
    K = ovl2d_ref.shape[1]
    n_pad = 8 * K
    idx_bits = (n_pad - 1).bit_length()
    idx_mask = (1 << idx_bits) - 1

    ovl = ovl2d_ref[...]                       # (8, K) f32; padding is -inf
    mask = ovl > overlap_threshold
    count = jnp.sum(mask.astype(jnp.int32))    # number of survivors

    # Packed sort keys: one reduction recovers both min key and its flat index.
    row = lax.broadcasted_iota(jnp.int32, (8, K), 0)
    col = lax.broadcasted_iota(jnp.int32, (8, K), 1)
    flat = row * K + col                       # original candidate index
    key_rand = (rnd2d_ref[...] << idx_bits) | flat   # random subsample order
    keys_valid = jnp.where(count > M, key_rand, flat)  # keep original order if no subsample
    keys = jnp.where(mask, keys_valid, _SENTINEL)

    # Valid count -> SMEM output, then read back as a true scalar.
    cnt_out[0] = jnp.minimum(count, M)
    n_sel = cnt_out[0]

    # Fully-unrolled selection loop (M is a small static hyper-parameter).
    for t in range(M):
        kmin_v = jnp.min(keys)                 # fused min/argmin via packed key
        kmin_smem[0] = kmin_v                  # move reduction result to scalar side
        kmin = kmin_smem[0]
        ok = t < n_sel
        sel = jnp.where(ok, kmin & idx_mask, 0)      # flat index of the winner
        r = idx_smem_ref[2 * sel]                    # scalar SMEM gathers
        s = idx_smem_ref[2 * sel + 1]
        o = ovl_smem_ref[sel]
        ref_out[t] = jnp.where(ok, r, 0)             # single scalar store each
        src_out[t] = jnp.where(ok, s, 0)
        ovl_out[t] = jnp.where(ok, o, 0.0)
        # remove the winner (packed keys are unique among valid candidates)
        keys = jnp.where(keys == kmin_v, _SENTINEL, keys)


def superpoint_target_generator(gt_corr_indices, gt_corr_overlaps,
                                num_targets, overlap_threshold, seed=0):
    """Pallas implementation of SuperPointTargetGenerator.forward.

    Args:
      gt_corr_indices:  (N, 2) int
      gt_corr_overlaps: (N,) float
    Returns:
      (gt_ref_corr_indices (num_targets,), gt_src_corr_indices (num_targets,),
       gt_corr_overlaps (num_targets,), count ())  -- zero-padded past `count`.
    """
    N = int(gt_corr_overlaps.shape[0])
    M = int(num_targets)

    if N == 0:
        return (jnp.zeros((M,), jnp.int32), jnp.zeros((M,), jnp.int32),
                jnp.zeros((M,), jnp.float32), jnp.zeros((), jnp.int32))

    # Sublane-dense layout: pad candidate axis to a multiple of 8*128 and view
    # it as (8, K) so each vreg carries 1024 candidates.
    n_pad = max(1024, ((N + 1023) // 1024) * 1024)
    K = n_pad // 8
    idx_bits = (n_pad - 1).bit_length()
    rand_bits = max(1, 30 - idx_bits)          # keep packed key a positive int32

    ovl_f32 = gt_corr_overlaps.astype(jnp.float32)                  # (N,)  -> SMEM
    ovl2d = jnp.pad(ovl_f32, (0, n_pad - N),
                    constant_values=-jnp.inf).reshape(8, K)         # (8,K) -> VMEM
    idx_flat = gt_corr_indices.astype(jnp.int32).reshape(-1)        # (2N,) -> SMEM (free reshape)

    # Random keys for the subsample path (host-side RNG mirrors the module's
    # np.random.choice; only consumed when count > num_targets).
    rnd2d = jax.random.randint(jax.random.PRNGKey(seed), (8, K),
                               0, 1 << rand_bits, dtype=jnp.int32)

    kernel = functools.partial(_target_gen_kernel, float(overlap_threshold), M)

    smem = pl.BlockSpec(memory_space=pltpu.MemorySpace.SMEM)
    vmem = pl.BlockSpec(memory_space=pltpu.MemorySpace.VMEM)

    ref_idx, src_idx, ovl_out, count = pl.pallas_call(
        kernel,
        out_shape=(
            jax.ShapeDtypeStruct((M,), jnp.int32),    # ref indices
            jax.ShapeDtypeStruct((M,), jnp.int32),    # src indices
            jax.ShapeDtypeStruct((M,), jnp.float32),  # overlaps
            jax.ShapeDtypeStruct((1,), jnp.int32),    # valid count
        ),
        in_specs=[vmem, vmem, smem, smem],
        out_specs=(smem, smem, smem, smem),
        scratch_shapes=[pltpu.SMEM((1,), jnp.int32)],
        compiler_params=pltpu.CompilerParams(
            vmem_limit_bytes=32 * 1024 * 1024),       # explicit, safe on v5e/v6e/v7x
    )(ovl2d, rnd2d, ovl_f32, idx_flat)

    return ref_idx, src_idx, ovl_out, count[0]


if __name__ == "__main__":
    import numpy as np

    key = jax.random.PRNGKey(0)
    k1, k2 = jax.random.split(key)

    N = 20
    num_targets = 8
    overlap_threshold = 0.1

    gt_corr_indices = jax.random.randint(k1, (N, 2), 0, 64, dtype=jnp.int32)
    gt_corr_overlaps = jax.random.uniform(k2, (N,), dtype=jnp.float32)

    ref_idx, src_idx, ovl, count = superpoint_target_generator(
        gt_corr_indices, gt_corr_overlaps, num_targets, overlap_threshold,
        seed=0)
    jax.block_until_ready((ref_idx, src_idx, ovl, count))

    gi = np.asarray(jax.device_get(gt_corr_indices))
    go = np.asarray(jax.device_get(gt_corr_overlaps))
    ref_np = np.asarray(jax.device_get(ref_idx))
    src_np = np.asarray(jax.device_get(src_idx))
    ovl_np = np.asarray(jax.device_get(ovl))

    c = int(count)
    expected = int((go > overlap_threshold).sum())
    assert c == min(expected, num_targets)
    assert bool(np.all(ovl_np[:c] > overlap_threshold))
    # every selected triple must be a real input correspondence
    for i in range(c):
        match = (gi[:, 0] == ref_np[i]) & (gi[:, 1] == src_np[i])
        assert bool(np.any(match & np.isclose(go, ovl_np[i])))

    # no-subsample path: high threshold -> few survivors, original order kept
    ref2, src2, ovl2, cnt2 = superpoint_target_generator(
        gt_corr_indices, gt_corr_overlaps, num_targets, 0.9, seed=0)
    jax.block_until_ready((ref2, src2, ovl2, cnt2))
    c2 = int(cnt2)
    exp_idx = np.nonzero(go > 0.9)[0]
    assert c2 == min(len(exp_idx), num_targets)
    if len(exp_idx) <= num_targets:
        assert np.array_equal(np.asarray(jax.device_get(ref2))[:c2], gi[exp_idx, 0])
        assert np.array_equal(np.asarray(jax.device_get(src2))[:c2], gi[exp_idx, 1])
        assert np.allclose(np.asarray(jax.device_get(ovl2))[:c2], go[exp_idx])

    print("KERNEL_OK")
</pallas_src>

<mosaic_0001>
module attributes {stable_mosaic.version = 11 : i64} {
  func.func @_target_gen_kernel(%arg0: memref<8x128xf32, #tpu.memory_space<vmem>>, %arg1: memref<8x128xi32, #tpu.memory_space<vmem>>, %arg2: memref<20xf32, #tpu.memory_space<smem>>, %arg3: memref<40xi32, #tpu.memory_space<smem>>, %arg4: memref<8xi32, #tpu.memory_space<smem>>, %arg5: memref<8xi32, #tpu.memory_space<smem>>, %arg6: memref<8xf32, #tpu.memory_space<smem>>, %arg7: memref<1xi32, #tpu.memory_space<smem>>, %arg8: memref<1xi32, #tpu.memory_space<smem>>) attributes {dimension_semantics = [], scalar_prefetch = 0 : i64, scratch_operands = 1 : i64, tpu.core_type = #tpu.core_type<tc>} {
    %c0 = arith.constant 0 : index
    %c0_0 = arith.constant 0 : index
    %0 = vector.load %arg0[%c0, %c0_0] : memref<8x128xf32, #tpu.memory_space<vmem>>, vector<8x128xf32>
    %cst = arith.constant 1.000000e-01 : f32
    %1 = vector.broadcast %cst : f32 to vector<8x128xf32>
    %2 = arith.cmpf ogt, %0, %1 : vector<8x128xf32>
    %3 = arith.extui %2 : vector<8x128xi1> to vector<8x128xi32>
    %4 = vector.shape_cast %3 : vector<8x128xi32> to vector<1x8x128xi32>
    %cst_1 = arith.constant dense<0> : vector<1xi32>
    %5 = vector.multi_reduction <add>, %4, %cst_1 [1, 2] : vector<1x8x128xi32> to vector<1xi32>
    %6 = vector.shape_cast %5 : vector<1xi32> to vector<1x1x1xi32>
    %7 = vector.extract %6[0, 0, 0] : i32 from vector<1x1x1xi32>
    %8 = tpu.iota {dimensions = array<i32: 0>} : vector<8x128xi32>
    %9 = tpu.iota {dimensions = array<i32: 1>} : vector<8x128xi32>
    %c128_i32 = arith.constant 128 : i32
    %10 = vector.broadcast %c128_i32 : i32 to vector<8x128xi32>
    %11 = arith.muli %8, %10 : vector<8x128xi32>
    %12 = arith.addi %11, %9 : vector<8x128xi32>
    %c0_2 = arith.constant 0 : index
    %c0_3 = arith.constant 0 : index
    %13 = vector.load %arg1[%c0_2, %c0_3] : memref<8x128xi32, #tpu.memory_space<vmem>>, vector<8x128xi32>
    %c10_i32 = arith.constant 10 : i32
    %14 = vector.broadcast %c10_i32 : i32 to vector<8x128xi32>
    %15 = arith.shli %13, %14 : vector<8x128xi32>
    %16 = arith.ori %15, %12 : vector<8x128xi32>
    %c8_i32 = arith.constant 8 : i32
    %17 = arith.cmpi sgt, %7, %c8_i32 : i32
    %18 = arith.select %17, %16, %12 : vector<8x128xi32>
    %c2147483647_i32 = arith.constant 2147483647 : i32
    %19 = vector.broadcast %c2147483647_i32 : i32 to vector<8x128xi32>
    %20 = arith.select %2, %18, %19 : vector<8x128xi1>, vector<8x128xi32>
    %c8_i32_4 = arith.constant 8 : i32
    %21 = arith.minsi %7, %c8_i32_4 : i32
    %c0_5 = arith.constant 0 : index
    %22 = memref.load %arg7[%c0_5] : memref<1xi32, #tpu.memory_space<smem>>
    memref.store %21, %arg7[%c0_5] : memref<1xi32, #tpu.memory_space<smem>>
    %c0_6 = arith.constant 0 : index
    %23 = memref.load %arg7[%c0_6] : memref<1xi32, #tpu.memory_space<smem>>
    %24 = vector.shape_cast %20 : vector<8x128xi32> to vector<1x8x128xi32>
    %cst_7 = arith.constant dense<2147483647> : vector<1xi32>
    %25 = vector.multi_reduction <minsi>, %24, %cst_7 [1, 2] : vector<1x8x128xi32> to vector<1xi32>
    %26 = vector.shape_cast %25 : vector<1xi32> to vector<1x1x1xi32>
    %27 = vector.extract %26[0, 0, 0] : i32 from vector<1x1x1xi32>
    %c0_8 = arith.constant 0 : index
    %28 = memref.load %arg8[%c0_8] : memref<1xi32, #tpu.memory_space<smem>>
    memref.store %27, %arg8[%c0_8] : memref<1xi32, #tpu.memory_space<smem>>
    %c0_9 = arith.constant 0 : index
    %29 = memref.load %arg8[%c0_9] : memref<1xi32, #tpu.memory_space<smem>>
    %c0_i32 = arith.constant 0 : i32
    %30 = arith.cmpi sgt, %23, %c0_i32 : i32
    %c1023_i32 = arith.constant 1023 : i32
    %31 = arith.andi %29, %c1023_i32 : i32
    %c0_i32_10 = arith.constant 0 : i32
    %32 = arith.select %30, %31, %c0_i32_10 : i32
    %c2_i32 = arith.constant 2 : i32
    %33 = arith.muli %c2_i32, %32 : i32
    %34 = arith.index_cast %33 : i32 to index
    %35 = memref.load %arg3[%34] : memref<40xi32, #tpu.memory_space<smem>>
    %c2_i32_11 = arith.constant 2 : i32
    %36 = arith.muli %c2_i32_11, %32 : i32
    %c1_i32 = arith.constant 1 : i32
    %37 = arith.addi %36, %c1_i32 : i32
    %38 = arith.index_cast %37 : i32 to index
    %39 = memref.load %arg3[%38] : memref<40xi32, #tpu.memory_space<smem>>
    %40 = arith.index_cast %32 : i32 to index
    %41 = memref.load %arg2[%40] : memref<20xf32, #tpu.memory_space<smem>>
    %c0_i32_12 = arith.constant 0 : i32
    %42 = arith.select %30, %35, %c0_i32_12 : i32
    %c0_13 = arith.constant 0 : index
    %43 = memref.load %arg4[%c0_13] : memref<8xi32, #tpu.memory_space<smem>>
    memref.store %42, %arg4[%c0_13] : memref<8xi32, #tpu.memory_space<smem>>
    %c0_i32_14 = arith.constant 0 : i32
    %44 = arith.select %30, %39, %c0_i32_14 : i32
    %c0_15 = arith.constant 0 : index
    %45 = memref.load %arg5[%c0_15] : memref<8xi32, #tpu.memory_space<smem>>
    memref.store %44, %arg5[%c0_15] : memref<8xi32, #tpu.memory_space<smem>>
    %cst_16 = arith.constant 0.000000e+00 : f32
    %46 = arith.select %30, %41, %cst_16 : f32
    %c0_17 = arith.constant 0 : index
    %47 = memref.load %arg6[%c0_17] : memref<8xf32, #tpu.memory_space<smem>>
    memref.store %46, %arg6[%c0_17] : memref<8xf32, #tpu.memory_space<smem>>
    %48 = vector.broadcast %27 : i32 to vector<8x128xi32>
    %49 = arith.cmpi eq, %20, %48 : vector<8x128xi32>
    %c2147483647_i32_18 = arith.constant 2147483647 : i32
    %50 = vector.broadcast %c2147483647_i32_18 : i32 to vector<8x128xi32>
    %51 = arith.select %49, %50, %20 : vector<8x128xi1>, vector<8x128xi32>
    %52 = vector.shape_cast %51 : vector<8x128xi32> to vector<1x8x128xi32>
    %cst_19 = arith.constant dense<2147483647> : vector<1xi32>
    %53 = vector.multi_reduction <minsi>, %52, %cst_19 [1, 2] : vector<1x8x128xi32> to vector<1xi32>
    %54 = vector.shape_cast %53 : vector<1xi32> to vector<1x1x1xi32>
    %55 = vector.extract %54[0, 0, 0] : i32 from vector<1x1x1xi32>
    %c0_20 = arith.constant 0 : index
    %56 = memref.load %arg8[%c0_20] : memref<1xi32, #tpu.memory_space<smem>>
    memref.store %55, %arg8[%c0_20] : memref<1xi32, #tpu.memory_space<smem>>
    %c0_21 = arith.constant 0 : index
    %57 = memref.load %arg8[%c0_21] : memref<1xi32, #tpu.memory_space<smem>>
    %c1_i32_22 = arith.constant 1 : i32
    %58 = arith.cmpi sgt, %23, %c1_i32_22 : i32
    %c1023_i32_23 = arith.constant 1023 : i32
    %59 = arith.andi %57, %c1023_i32_23 : i32
    %c0_i32_24 = arith.constant 0 : i32
    %60 = arith.select %58, %59, %c0_i32_24 : i32
    %c2_i32_25 = arith.constant 2 : i32
    %61 = arith.muli %c2_i32_25, %60 : i32
    %62 = arith.index_cast %61 : i32 to index
    %63 = memref.load %arg3[%62] : memref<40xi32, #tpu.memory_space<smem>>
    %c2_i32_26 = arith.constant 2 : i32
    %64 = arith.muli %c2_i32_26, %60 : i32
    %c1_i32_27 = arith.constant 1 : i32
    %65 = arith.addi %64, %c1_i32_27 : i32
    %66 = arith.index_cast %65 : i32 to index
    %67 = memref.load %arg3[%66] : memref<40xi32, #tpu.memory_space<smem>>
    %68 = arith.index_cast %60 : i32 to index
    %69 = memref.load %arg2[%68] : memref<20xf32, #tpu.memory_space<smem>>
    %c0_i32_28 = arith.constant 0 : i32
    %70 = arith.select %58, %63, %c0_i32_28 : i32
    %c1 = arith.constant 1 : index
    %71 = memref.load %arg4[%c1] : memref<8xi32, #tpu.memory_space<smem>>
    memref.store %70, %arg4[%c1] : memref<8xi32, #tpu.memory_space<smem>>
    %c0_i32_29 = arith.constant 0 : i32
    %72 = arith.select %58, %67, %c0_i32_29 : i32
    %c1_30 = arith.constant 1 : index
    %73 = memref.load %arg5[%c1_30] : memref<8xi32, #tpu.memory_space<smem>>
    memref.store %72, %arg5[%c1_30] : memref<8xi32, #tpu.memory_space<smem>>
    %cst_31 = arith.constant 0.000000e+00 : f32
    %74 = arith.select %58, %69, %cst_31 : f32
    %c1_32 = arith.constant 1 : index
    %75 = memref.load %arg6[%c1_32] : memref<8xf32, #tpu.memory_space<smem>>
    memref.store %74, %arg6[%c1_32] : memref<8xf32, #tpu.memory_space<smem>>
    %76 = vector.broadcast %55 : i32 to vector<8x128xi32>
    %77 = arith.cmpi eq, %51, %76 : vector<8x128xi32>
    %c2147483647_i32_33 = arith.constant 2147483647 : i32
    %78 = vector.broadcast %c2147483647_i32_33 : i32 to vector<8x128xi32>
    %79 = arith.select %77, %78, %51 : vector<8x128xi1>, vector<8x128xi32>
    %80 = vector.shape_cast %79 : vector<8x128xi32> to vector<1x8x128xi32>
    %cst_34 = arith.constant dense<2147483647> : vector<1xi32>
    %81 = vector.multi_reduction <minsi>, %80, %cst_34 [1, 2] : vector<1x8x128xi32> to vector<1xi32>
    %82 = vector.shape_cast %81 : vector<1xi32> to vector<1x1x1xi32>
    %83 = vector.extract %82[0, 0, 0] : i32 from vector<1x1x1xi32>
    %c0_35 = arith.constant 0 : index
    %84 = memref.load %arg8[%c0_35] : memref<1xi32, #tpu.memory_space<smem>>
    memref.store %83, %arg8[%c0_35] : memref<1xi32, #tpu.memory_space<smem>>
    %c0_36 = arith.constant 0 : index
    %85 = memref.load %arg8[%c0_36] : memref<1xi32, #tpu.memory_space<smem>>
    %c2_i32_37 = arith.constant 2 : i32
    %86 = arith.cmpi sgt, %23, %c2_i32_37 : i32
    %c1023_i32_38 = arith.constant 1023 : i32
    %87 = arith.andi %85, %c1023_i32_38 : i32
    %c0_i32_39 = arith.constant 0 : i32
    %88 = arith.select %86, %87, %c0_i32_39 : i32
    %c2_i32_40 = arith.constant 2 : i32
    %89 = arith.muli %c2_i32_40, %88 : i32
    %90 = arith.index_cast %89 : i32 to index
    %91 = memref.load %arg3[%90] : memref<40xi32, #tpu.memory_space<smem>>
    %c2_i32_41 = arith.constant 2 : i32
    %92 = arith.muli %c2_i32_41, %88 : i32
    %c1_i32_42 = arith.constant 1 : i32
    %93 = arith.addi %92, %c1_i32_42 : i32
    %94 = arith.index_cast %93 : i32 to index
    %95 = memref.load %arg3[%94] : memref<40xi32, #tpu.memory_space<smem>>
    %96 = arith.index_cast %88 : i32 to index
    %97 = memref.load %arg2[%96] : memref<20xf32, #tpu.memory_space<smem>>
    %c0_i32_43 = arith.constant 0 : i32
    %98 = arith.select %86, %91, %c0_i32_43 : i32
    %c2 = arith.constant 2 : index
    %99 = memref.load %arg4[%c2] : memref<8xi32, #tpu.memory_space<smem>>
    memref.store %98, %arg4[%c2] : memref<8xi32, #tpu.memory_space<smem>>
    %c0_i32_44 = arith.constant 0 : i32
    %100 = arith.select %86, %95, %c0_i32_44 : i32
    %c2_45 = arith.constant 2 : index
    %101 = memref.load %arg5[%c2_45] : memref<8xi32, #tpu.memory_space<smem>>
    memref.store %100, %arg5[%c2_45] : memref<8xi32, #tpu.memory_space<smem>>
    %cst_46 = arith.constant 0.000000e+00 : f32
    %102 = arith.select %86, %97, %cst_46 : f32
    %c2_47 = arith.constant 2 : index
    %103 = memref.load %arg6[%c2_47] : memref<8xf32, #tpu.memory_space<smem>>
    memref.store %102, %arg6[%c2_47] : memref<8xf32, #tpu.memory_space<smem>>
    %104 = vector.broadcast %83 : i32 to vector<8x128xi32>
    %105 = arith.cmpi eq, %79, %104 : vector<8x128xi32>
    %c2147483647_i32_48 = arith.constant 2147483647 : i32
    %106 = vector.broadcast %c2147483647_i32_48 : i32 to vector<8x128xi32>
    %107 = arith.select %105, %106, %79 : vector<8x128xi1>, vector<8x128xi32>
    %108 = vector.shape_cast %107 : vector<8x128xi32> to vector<1x8x128xi32>
    %cst_49 = arith.constant dense<2147483647> : vector<1xi32>
    %109 = vector.multi_reduction <minsi>, %108, %cst_49 [1, 2] : vector<1x8x128xi32> to vector<1xi32>
    %110 = vector.shape_cast %109 : vector<1xi32> to vector<1x1x1xi32>
    %111 = vector.extract %110[0, 0, 0] : i32 from vector<1x1x1xi32>
    %c0_50 = arith.constant 0 : index
    %112 = memref.load %arg8[%c0_50] : memref<1xi32, #tpu.memory_space<smem>>
    memref.store %111, %arg8[%c0_50] : memref<1xi32, #tpu.memory_space<smem>>
    %c0_51 = arith.constant 0 : index
    %113 = memref.load %arg8[%c0_51] : memref<1xi32, #tpu.memory_space<smem>>
    %c3_i32 = arith.constant 3 : i32
    %114 = arith.cmpi sgt, %23, %c3_i32 : i32
    %c1023_i32_52 = arith.constant 1023 : i32
    %115 = arith.andi %113, %c1023_i32_52 : i32
    %c0_i32_53 = arith.constant 0 : i32
    %116 = arith.select %114, %115, %c0_i32_53 : i32
    %c2_i32_54 = arith.constant 2 : i32
    %117 = arith.muli %c2_i32_54, %116 : i32
    %118 = arith.index_cast %117 : i32 to index
    %119 = memref.load %arg3[%118] : memref<40xi32, #tpu.memory_space<smem>>
    %c2_i32_55 = arith.constant 2 : i32
    %120 = arith.muli %c2_i32_55, %116 : i32
    %c1_i32_56 = arith.constant 1 : i32
    %121 = arith.addi %120, %c1_i32_56 : i32
    %122 = arith.index_cast %121 : i32 to index
    %123 = memref.load %arg3[%122] : memref<40xi32, #tpu.memory_space<smem>>
    %124 = arith.index_cast %116 : i32 to index
    %125 = memref.load %arg2[%124] : memref<20xf32, #tpu.memory_space<smem>>
    %c0_i32_57 = arith.constant 0 : i32
    %126 = arith.select %114, %119, %c0_i32_57 : i32
    %c3 = arith.constant 3 : index
    %127 = memref.load %arg4[%c3] : memref<8xi32, #tpu.memory_space<smem>>
    memref.store %126, %arg4[%c3] : memref<8xi32, #tpu.memory_space<smem>>
    %c0_i32_58 = arith.constant 0 : i32
    %128 = arith.select %114, %123, %c0_i32_58 : i32
    %c3_59 = arith.constant 3 : index
    %129 = memref.load %arg5[%c3_59] : memref<8xi32, #tpu.memory_space<smem>>
    memref.store %128, %arg5[%c3_59] : memref<8xi32, #tpu.memory_space<smem>>
    %cst_60 = arith.constant 0.000000e+00 : f32
    %130 = arith.select %114, %125, %cst_60 : f32
    %c3_61 = arith.constant 3 : index
    %131 = memref.load %arg6[%c3_61] : memref<8xf32, #tpu.memory_space<smem>>
    memref.store %130, %arg6[%c3_61] : memref<8xf32, #tpu.memory_space<smem>>
    %132 = vector.broadcast %111 : i32 to vector<8x128xi32>
    %133 = arith.cmpi eq, %107, %132 : vector<8x128xi32>
    %c2147483647_i32_62 = arith.constant 2147483647 : i32
    %134 = vector.broadcast %c2147483647_i32_62 : i32 to vector<8x128xi32>
    %135 = arith.select %133, %134, %107 : vector<8x128xi1>, vector<8x128xi32>
    %136 = vector.shape_cast %135 : vector<8x128xi32> to vector<1x8x128xi32>
    %cst_63 = arith.constant dense<2147483647> : vector<1xi32>
    %137 = vector.multi_reduction <minsi>, %136, %cst_63 [1, 2] : vector<1x8x128xi32> to vector<1xi32>
    %138 = vector.shape_cast %137 : vector<1xi32> to vector<1x1x1xi32>
    %139 = vector.extract %138[0, 0, 0] : i32 from vector<1x1x1xi32>
    %c0_64 = arith.constant 0 : index
    %140 = memref.load %arg8[%c0_64] : memref<1xi32, #tpu.memory_space<smem>>
    memref.store %139, %arg8[%c0_64] : memref<1xi32, #tpu.memory_space<smem>>
    %c0_65 = arith.constant 0 : index
    %141 = memref.load %arg8[%c0_65] : memref<1xi32, #tpu.memory_space<smem>>
    %c4_i32 = arith.constant 4 : i32
    %142 = arith.cmpi sgt, %23, %c4_i32 : i32
    %c1023_i32_66 = arith.constant 1023 : i32
    %143 = arith.andi %141, %c1023_i32_66 : i32
    %c0_i32_67 = arith.constant 0 : i32
    %144 = arith.select %142, %143, %c0_i32_67 : i32
    %c2_i32_68 = arith.constant 2 : i32
    %145 = arith.muli %c2_i32_68, %144 : i32
    %146 = arith.index_cast %145 : i32 to index
    %147 = memref.load %arg3[%146] : memref<40xi32, #tpu.memory_space<smem>>
    %c2_i32_69 = arith.constant 2 : i32
    %148 = arith.muli %c2_i32_69, %144 : i32
    %c1_i32_70 = arith.constant 1 : i32
    %149 = arith.addi %148, %c1_i32_70 : i32
    %150 = arith.index_cast %149 : i32 to index
    %151 = memref.load %arg3[%150] : memref<40xi32, #tpu.memory_space<smem>>
    %152 = arith.index_cast %144 : i32 to index
    %153 = memref.load %arg2[%152] : memref<20xf32, #tpu.memory_space<smem>>
    %c0_i32_71 = arith.constant 0 : i32
    %154 = arith.select %142, %147, %c0_i32_71 : i32
    %c4 = arith.constant 4 : index
    %155 = memref.load %arg4[%c4] : memref<8xi32, #tpu.memory_space<smem>>
    memref.store %154, %arg4[%c4] : memref<8xi32, #tpu.memory_space<smem>>
    %c0_i32_72 = arith.constant 0 : i32
    %156 = arith.select %142, %151, %c0_i32_72 : i32
    %c4_73 = arith.constant 4 : index
    %157 = memref.load %arg5[%c4_73] : memref<8xi32, #tpu.memory_space<smem>>
    memref.store %156, %arg5[%c4_73] : memref<8xi32, #tpu.memory_space<smem>>
    %cst_74 = arith.constant 0.000000e+00 : f32
    %158 = arith.select %142, %153, %cst_74 : f32
    %c4_75 = arith.constant 4 : index
    %159 = memref.load %arg6[%c4_75] : memref<8xf32, #tpu.memory_space<smem>>
    memref.store %158, %arg6[%c4_75] : memref<8xf32, #tpu.memory_space<smem>>
    %160 = vector.broadcast %139 : i32 to vector<8x128xi32>
    %161 = arith.cmpi eq, %135, %160 : vector<8x128xi32>
    %c2147483647_i32_76 = arith.constant 2147483647 : i32
    %162 = vector.broadcast %c2147483647_i32_76 : i32 to vector<8x128xi32>
    %163 = arith.select %161, %162, %135 : vector<8x128xi1>, vector<8x128xi32>
    %164 = vector.shape_cast %163 : vector<8x128xi32> to vector<1x8x128xi32>
    %cst_77 = arith.constant dense<2147483647> : vector<1xi32>
    %165 = vector.multi_reduction <minsi>, %164, %cst_77 [1, 2] : vector<1x8x128xi32> to vector<1xi32>
    %166 = vector.shape_cast %165 : vector<1xi32> to vector<1x1x1xi32>
    %167 = vector.extract %166[0, 0, 0] : i32 from vector<1x1x1xi32>
    %c0_78 = arith.constant 0 : index
    %168 = memref.load %arg8[%c0_78] : memref<1xi32, #tpu.memory_space<smem>>
    memref.store %167, %arg8[%c0_78] : memref<1xi32, #tpu.memory_space<smem>>
    %c0_79 = arith.constant 0 : index
    %169 = memref.load %arg8[%c0_79] : memref<1xi32, #tpu.memory_space<smem>>
    %c5_i32 = arith.constant 5 : i32
    %170 = arith.cmpi sgt, %23, %c5_i32 : i32
    %c1023_i32_80 = arith.constant 1023 : i32
    %171 = arith.andi %169, %c1023_i32_80 : i32
    %c0_i32_81 = arith.constant 0 : i32
    %172 = arith.select %170, %171, %c0_i32_81 : i32
    %c2_i32_82 = arith.constant 2 : i32
    %173 = arith.muli %c2_i32_82, %172 : i32
    %174 = arith.index_cast %173 : i32 to index
    %175 = memref.load %arg3[%174] : memref<40xi32, #tpu.memory_space<smem>>
    %c2_i32_83 = arith.constant 2 : i32
    %176 = arith.muli %c2_i32_83, %172 : i32
    %c1_i32_84 = arith.constant 1 : i32
    %177 = arith.addi %176, %c1_i32_84 : i32
    %178 = arith.index_cast %177 : i32 to index
    %179 = memref.load %arg3[%178] : memref<40xi32, #tpu.memory_space<smem>>
    %180 = arith.index_cast %172 : i32 to index
    %181 = memref.load %arg2[%180] : memref<20xf32, #tpu.memory_space<smem>>
    %c0_i32_85 = arith.constant 0 : i32
    %182 = arith.select %170, %175, %c0_i32_85 : i32
    %c5 = arith.constant 5 : index
    %183 = memref.load %arg4[%c5] : memref<8xi32, #tpu.memory_space<smem>>
    memref.store %182, %arg4[%c5] : memref<8xi32, #tpu.memory_space<smem>>
    %c0_i32_86 = arith.constant 0 : i32
    %184 = arith.select %170, %179, %c0_i32_86 : i32
    %c5_87 = arith.constant 5 : index
    %185 = memref.load %arg5[%c5_87] : memref<8xi32, #tpu.memory_space<smem>>
    memref.store %184, %arg5[%c5_87] : memref<8xi32, #tpu.memory_space<smem>>
    %cst_88 = arith.constant 0.000000e+00 : f32
    %186 = arith.select %170, %181, %cst_88 : f32
    %c5_89 = arith.constant 5 : index
    %187 = memref.load %arg6[%c5_89] : memref<8xf32, #tpu.memory_space<smem>>
    memref.store %186, %arg6[%c5_89] : memref<8xf32, #tpu.memory_space<smem>>
    %188 = vector.broadcast %167 : i32 to vector<8x128xi32>
    %189 = arith.cmpi eq, %163, %188 : vector<8x128xi32>
    %c2147483647_i32_90 = arith.constant 2147483647 : i32
    %190 = vector.broadcast %c2147483647_i32_90 : i32 to vector<8x128xi32>
    %191 = arith.select %189, %190, %163 : vector<8x128xi1>, vector<8x128xi32>
    %192 = vector.shape_cast %191 : vector<8x128xi32> to vector<1x8x128xi32>
    %cst_91 = arith.constant dense<2147483647> : vector<1xi32>
    %193 = vector.multi_reduction <minsi>, %192, %cst_91 [1, 2] : vector<1x8x128xi32> to vector<1xi32>
    %194 = vector.shape_cast %193 : vector<1xi32> to vector<1x1x1xi32>
    %195 = vector.extract %194[0, 0, 0] : i32 from vector<1x1x1xi32>
    %c0_92 = arith.constant 0 : index
    %196 = memref.load %arg8[%c0_92] : memref<1xi32, #tpu.memory_space<smem>>
    memref.store %195, %arg8[%c0_92] : memref<1xi32, #tpu.memory_space<smem>>
    %c0_93 = arith.constant 0 : index
    %197 = memref.load %arg8[%c0_93] : memref<1xi32, #tpu.memory_space<smem>>
    %c6_i32 = arith.constant 6 : i32
    %198 = arith.cmpi sgt, %23, %c6_i32 : i32
    %c1023_i32_94 = arith.constant 1023 : i32
    %199 = arith.andi %197, %c1023_i32_94 : i32
    %c0_i32_95 = arith.constant 0 : i32
    %200 = arith.select %198, %199, %c0_i32_95 : i32
    %c2_i32_96 = arith.constant 2 : i32
    %201 = arith.muli %c2_i32_96, %200 : i32
    %202 = arith.index_cast %201 : i32 to index
    %203 = memref.load %arg3[%202] : memref<40xi32, #tpu.memory_space<smem>>
    %c2_i32_97 = arith.constant 2 : i32
    %204 = arith.muli %c2_i32_97, %200 : i32
    %c1_i32_98 = arith.constant 1 : i32
    %205 = arith.addi %204, %c1_i32_98 : i32
    %206 = arith.index_cast %205 : i32 to index
    %207 = memref.load %arg3[%206] : memref<40xi32, #tpu.memory_space<smem>>
    %208 = arith.index_cast %200 : i32 to index
    %209 = memref.load %arg2[%208] : memref<20xf32, #tpu.memory_space<smem>>
    %c0_i32_99 = arith.constant 0 : i32
    %210 = arith.select %198, %203, %c0_i32_99 : i32
    %c6 = arith.constant 6 : index
    %211 = memref.load %arg4[%c6] : memref<8xi32, #tpu.memory_space<smem>>
    memref.store %210, %arg4[%c6] : memref<8xi32, #tpu.memory_space<smem>>
    %c0_i32_100 = arith.constant 0 : i32
    %212 = arith.select %198, %207, %c0_i32_100 : i32
    %c6_101 = arith.constant 6 : index
    %213 = memref.load %arg5[%c6_101] : memref<8xi32, #tpu.memory_space<smem>>
    memref.store %212, %arg5[%c6_101] : memref<8xi32, #tpu.memory_space<smem>>
    %cst_102 = arith.constant 0.000000e+00 : f32
    %214 = arith.select %198, %209, %cst_102 : f32
    %c6_103 = arith.constant 6 : index
    %215 = memref.load %arg6[%c6_103] : memref<8xf32, #tpu.memory_space<smem>>
    memref.store %214, %arg6[%c6_103] : memref<8xf32, #tpu.memory_space<smem>>
    %216 = vector.broadcast %195 : i32 to vector<8x128xi32>
    %217 = arith.cmpi eq, %191, %216 : vector<8x128xi32>
    %c2147483647_i32_104 = arith.constant 2147483647 : i32
    %218 = vector.broadcast %c2147483647_i32_104 : i32 to vector<8x128xi32>
    %219 = arith.select %217, %218, %191 : vector<8x128xi1>, vector<8x128xi32>
    %220 = vector.shape_cast %219 : vector<8x128xi32> to vector<1x8x128xi32>
    %cst_105 = arith.constant dense<2147483647> : vector<1xi32>
    %221 = vector.multi_reduction <minsi>, %220, %cst_105 [1, 2] : vector<1x8x128xi32> to vector<1xi32>
    %222 = vector.shape_cast %221 : vector<1xi32> to vector<1x1x1xi32>
    %223 = vector.extract %222[0, 0, 0] : i32 from vector<1x1x1xi32>
    %c0_106 = arith.constant 0 : index
    %224 = memref.load %arg8[%c0_106] : memref<1xi32, #tpu.memory_space<smem>>
    memref.store %223, %arg8[%c0_106] : memref<1xi32, #tpu.memory_space<smem>>
    %c0_107 = arith.constant 0 : index
    %225 = memref.load %arg8[%c0_107] : memref<1xi32, #tpu.memory_space<smem>>
    %c7_i32 = arith.constant 7 : i32
    %226 = arith.cmpi sgt, %23, %c7_i32 : i32
    %c1023_i32_108 = arith.constant 1023 : i32
    %227 = arith.andi %225, %c1023_i32_108 : i32
    %c0_i32_109 = arith.constant 0 : i32
    %228 = arith.select %226, %227, %c0_i32_109 : i32
    %c2_i32_110 = arith.constant 2 : i32
    %229 = arith.muli %c2_i32_110, %228 : i32
    %230 = arith.index_cast %229 : i32 to index
    %231 = memref.load %arg3[%230] : memref<40xi32, #tpu.memory_space<smem>>
    %c2_i32_111 = arith.constant 2 : i32
    %232 = arith.muli %c2_i32_111, %228 : i32
    %c1_i32_112 = arith.constant 1 : i32
    %233 = arith.addi %232, %c1_i32_112 : i32
    %234 = arith.index_cast %233 : i32 to index
    %235 = memref.load %arg3[%234] : memref<40xi32, #tpu.memory_space<smem>>
    %236 = arith.index_cast %228 : i32 to index
    %237 = memref.load %arg2[%236] : memref<20xf32, #tpu.memory_space<smem>>
    %c0_i32_113 = arith.constant 0 : i32
    %238 = arith.select %226, %231, %c0_i32_113 : i32
    %c7 = arith.constant 7 : index
    %239 = memref.load %arg4[%c7] : memref<8xi32, #tpu.memory_space<smem>>
    memref.store %238, %arg4[%c7] : memref<8xi32, #tpu.memory_space<smem>>
    %c0_i32_114 = arith.constant 0 : i32
    %240 = arith.select %226, %235, %c0_i32_114 : i32
    %c7_115 = arith.constant 7 : index
    %241 = memref.load %arg5[%c7_115] : memref<8xi32, #tpu.memory_space<smem>>
    memref.store %240, %arg5[%c7_115] : memref<8xi32, #tpu.memory_space<smem>>
    %cst_116 = arith.constant 0.000000e+00 : f32
    %242 = arith.select %226, %237, %cst_116 : f32
    %c7_117 = arith.constant 7 : index
    %243 = memref.load %arg6[%c7_117] : memref<8xf32, #tpu.memory_space<smem>>
    memref.store %242, %arg6[%c7_117] : memref<8xf32, #tpu.memory_space<smem>>
    return
  }
}

</mosaic_0001>

<bundles_post_ra>
// kernel: tpu_custom_call.1
= control target key start
LH: loop header
LB: loop body
LE: loop exit
PB: predicated region body
PF: predicated region fallthrough
CT: control target
= control target key end

     0   :  { %13 = vsyncpa [#allocation4], 0  ;;  %s992_s0 = inlined_call_operand.hbm [shape: f32[8,128], index: 0, kind: input, shape index: {}]   ;;  %s993_s1 = inlined_call_operand.hbm [shape: s32[8,128], index: 1, kind: input, shape index: {}]   ;;  %s994_s2 = inlined_call_operand.vmem [shape: f32[20], index: 2, kind: input, shape index: {}]   ;;  %s995_s3 = inlined_call_operand.vmem [shape: s32[40], index: 3, kind: input, shape index: {}]   ;;  %s996_s4 = inlined_call_operand.hbm [shape: s32[8], index: 4, kind: output, shape index: {0}]   ;;  %s997_s5 = inlined_call_operand.hbm [shape: s32[8], index: 5, kind: output, shape index: {1}]   ;;  %s998_s6 = inlined_call_operand.hbm [shape: f32[8], index: 6, kind: output, shape index: {2}]   ;;  %s999_s7 = inlined_call_operand.hbm [shape: s32[1], index: 7, kind: output, shape index: {3}]  }
   0x1   :  { %14 = vsyncpa [#allocation8], 0 }
   0x2   :  { %15 = vsyncpa [#allocation6], 0 }
   0x3   :  { %16 = vsyncpa [#allocation11], 0 }
   0x4   :  { %17 = vsyncpa [#allocation5], 0 }
   0x5   :  { %18 = vsyncpa [#allocation14], 0 }
   0x6   :  { %19 = vsyncpa [#allocation17], 0  ;;  %s794_s24 = smov [#allocation3]   ;;  %s795_s26 = smov [#allocation7]  }
   0x7   :  { %s26_s25 = sshll.u32 %s794_s24, 4  ;;  %s36_s27 = sshll.u32 %s795_s26, 4  ;;  %s27_s25 = int_to_ptr.vmem [resolvable:$true] %s26_s25  ;;  %s37_s27 = int_to_ptr.vmem [resolvable:$true] %s36_s27 }
   0x8   :  { %s632_s30 = scalar_lea.hbm %s992_s0, 128 }
   0x9   :  { %p633_p0 = scmp.ne.s32.totalorder %s992_s0, %s632_s30  ;;  %p636_p1 = scmp.lt.u32.totalorder %s632_s30, %s992_s0 }
   0xb   :  { %p638_p2 = pnand %p636_p1, %p633_p0 }
   0xd   :  { %641 = shalt.err (!%p638_p2)
}
   0xe   :  { %s642_s12 = scalar_lea.vmem %s27_s25, 128  ;;  %p647_p4 = scmp.lt.s32.totalorder %s27_s25, %s27_s25 }
   0xf   :  { %p643_p3 = scmp.ne.s32.totalorder %s27_s25, %s642_s12  ;;  %p648_p5 = scmp.lt.s32.totalorder %s642_s12, %s642_s12 }
  0x11   :  { %p649_p6 = por %p648_p5, %p647_p4 }
  0x13   :  { %p650_p7 = pnand %p649_p6, %p643_p3 }
  0x15   :  { %653 = shalt.err (!%p650_p7)
}
  0x16   :  { %29 = dma.hbm_to_vmem [thread:$0]  %s992_s0, 128, %s27_s25, [#allocation4]  }
  0x17   :  { %s654_s17 = scalar_lea.hbm %s993_s1, 128 }
  0x18   :  { %p655_p8 = scmp.ne.s32.totalorder %s993_s1, %s654_s17  ;;  %p658_p9 = scmp.lt.u32.totalorder %s654_s17, %s993_s1 }
  0x1a   :  { %p660_p10 = pnand %p658_p9, %p655_p8 }
  0x1c   :  { %663 = shalt.err (!%p660_p10)
}
  0x1d   :  { %s664_s22 = scalar_lea.vmem %s37_s27, 128  ;;  %p669_p12 = scmp.lt.s32.totalorder %s37_s27, %s37_s27 }
  0x1e   :  { %p665_p11 = scmp.ne.s32.totalorder %s37_s27, %s664_s22  ;;  %p670_p13 = scmp.lt.s32.totalorder %s664_s22, %s664_s22 }
  0x20   :  { %p671_p0 = por %p670_p13, %p669_p12 }
  0x22   :  { %p672_p1 = pnand %p671_p0, %p665_p11 }
  0x24   :  { %675 = shalt.err (!%p672_p1)
}
  0x25   :  { %39 = dma.hbm_to_vmem [thread:$0]  %s993_s1, 128, %s37_s27, [#allocation8]  }
  0x26   :  { %s46_s26 = sshll.u32 %s994_s2, 4  ;;  %s56_s30 = sshll.u32 %s995_s3, 4  ;;  %s47_s26 = int_to_ptr.vmem [resolvable:$true] %s46_s26  ;;  %s57_s30 = int_to_ptr.vmem [resolvable:$true] %s56_s30 }
  0x27   :  { %s676_s8 = scalar_lea.vmem %s47_s26, 16  ;;  %p681_p3 = scmp.lt.s32.totalorder %s47_s26, %s47_s26 }
  0x28   :  { %p677_p2 = scmp.ne.s32.totalorder %s47_s26, %s676_s8  ;;  %p682_p4 = scmp.lt.s32.totalorder %s676_s8, %s676_s8 }
  0x2a   :  { %p683_p5 = por %p682_p4, %p681_p3 }
  0x2c   :  { %p684_p6 = pnand %p683_p5, %p677_p2 }
  0x2e   :  { %687 = shalt.err (!%p684_p6)
}
  0x2f   :  { %s796_s9 = smov [#allocation9]   ;;  %s688_s1 = scalar_lea.vmem %s57_s30, 16 }
  0x30   :  { %49 = dma.vmem_to_smem %s47_s26, 16, %s796_s9, [#allocation6]  }
  0x31   :  { %p689_p7 = scmp.ne.s32.totalorder %s57_s30, %s688_s1  ;;  %p693_p8 = scmp.lt.s32.totalorder %s57_s30, %s57_s30 }
  0x32   :  { %p694_p9 = scmp.lt.s32.totalorder %s688_s1, %s688_s1 }
  0x34   :  { %p695_p10 = por %p694_p9, %p693_p8 }
  0x36   :  { %p696_p11 = pnand %p695_p10, %p689_p7 }
  0x38   :  { %699 = shalt.err (!%p696_p11)
}
  0x39   :  { %s797_s2 = smov [#allocation10]  }
  0x3a   :  { %59 = dma.vmem_to_smem %s57_s30, 16, %s797_s2, [#allocation11]  }
  0x3b   :  { %740 = dma.done.wait [#allocation4], 128  }
  0x3c   :  { %741 = vsyncadd [#allocation4], 4294967168 }
  0x3d   :  { %742 = dma.done.wait [#allocation8], 128  }
  0x3e   :  { %743 = vsyncadd [#allocation8], 4294967168 }
  0x3f   :  { %744 = dma.done.wait [#allocation6], 16  }
  0x40   :  { %745 = vsyncadd [#allocation6], 4294967280 }
  0x41   :  { %746 = dma.done.wait [#allocation11], 16  }
  0x42   :  { %747 = vsyncadd [#allocation11], 4294967280 }
  0x43   :  { %72 = sfence }
  0x44   :  { %v73_v0 = vld [vmem:[#allocation3] sm:$0xff]  ;;  %v798_v1 = vmov 0   ;;  %v95_v19 = vlaneseq  ;;  %v101_v23 = vld [vmem:[#allocation7] sm:$0xff] }
  0x45   :  { %vm74_vm0 = vcmp.gt.f32.partialorder %v73_v0, 0.1  ;;  %v102_v25 = vshll.u32 %v101_v23, 10 }
  0x46   :  { %v75_v2 = vsel %vm74_vm0, 1, %v798_v1  ;;  %v96_v20 = vshrl.u32 %v95_v19, 7  ;;  %v98_v21 = vand.u32 127, %v95_v19 }
  0x47   :  { %v77_v3 = vshrl.u32 %v75_v2, 16  ;;  %v76_v4 = vand.u32 65535, %v75_v2 }
  0x48   :  { %v99_v22 = vmul.u32 128, %v96_v20 }
  0x49   :  { %v79_v5 = vcvt.s32.f32 %v77_v3  ;;  %v78_v6 = vcvt.s32.f32 %v76_v4 }
  0x4a   :  { %v100_v24 = vadd.s32 %v99_v22, %v98_v21 }
  0x4b   :  { %82 = vadd.xlane.f32.xlu0 %v79_v5 }
  0x4c   :  { %v103_v26 = vor.u32 %v102_v25, %v100_v24 }
  0x4f   :  { %80 = vadd.xlane.f32.xlu0 %v78_v6 }
  0xd8   :  { %v83_v7 = vpop.xlane.xlu0 %82 }
  0xd9   :  { %v85_v8 = vcvt.f32.s32 %v83_v7 }
  0xdb   :  { %v86_v10 = vshll.u32 %v85_v8, 16 }
  0xdc   :  { %v81_v9 = vpop.xlane.xlu0 %80 }
  0xdd   :  { %v84_v11 = vcvt.f32.s32 %v81_v9 }
  0xdf   :  { %v87_v12 = vadd.s32 %v86_v10, %v84_v11 }
  0xe1   :  { %v88_v13 = vrot.slane %v87_v12, 4 }
  0xe3   :  { %v89_v14 = vadd.s32 %v88_v13, %v87_v12 }
  0xe5   :  { %v90_v15 = vrot.slane %v89_v14, 2 }
  0xe7   :  { %v91_v16 = vadd.s32 %v90_v15, %v89_v14 }
  0xe9   :  { %v92_v17 = vrot.slane %v91_v16, 1 }
  0xeb   :  { %v93_v18 = vadd.s32 %v92_v17, %v91_v16 }
  0xed   :  { %541 = vpush %v93_v18 }
 0x11e   :  { %s874_s3 = spop %541 }
 0x11f   :  { %p104_p12 = scmp.gt.s32.totalorder %s874_s3, 8  ;;  %p110_p13 = scmp.lt.s32.totalorder %s874_s3, 8 }
 0x120   :  { %p568_p0 = scmp.gt.s32.totalorder %s874_s3, 0  ;;  %p576_p1 = scmp.gt.s32.totalorder %s874_s3, 1 }
 0x121   :  { %s105_s27 = scalar_select %p104_p12, 1, 0 }
 0x122   :  { %s111_s10 = scalar_select %p110_p13, %s874_s3, 8 }
 0x123   :  { %v106_v27 = vstv %s105_s27  ;;  %p584_p2 = scmp.gt.s32.totalorder %s874_s3, 2  ;;  %p592_p3 = scmp.gt.s32.totalorder %s874_s3, 3 }
 0x124   :  { %vm107_vm1 = vcmp.eq.s32.totalorder %v106_v27, 1  ;;  %113 = sst [smem:[#allocation16]] %s111_s10  ;;  %p600_p4 = scmp.gt.s32.totalorder %s874_s3, 4 }
 0x125   :  { %v108_v28 = vsel %vm107_vm1, %v103_v26, %v100_v24  ;;  %p608_p5 = scmp.gt.s32.totalorder %s874_s3, 5  ;;  %p616_p6 = scmp.gt.s32.totalorder %s874_s3, 6 }
 0x126   :  { %v109_v29 = vsel %vm74_vm0, %v108_v28, 2147483647 }
 0x127   :  { %v116_v30 = vshra.s32 %v109_v29, 16  ;;  %v115_v32 = vand.u32 65535, %v109_v29 }
 0x129   :  { %v118_v31 = vcvt.s32.f32 %v116_v30  ;;  %v117_v34 = vcvt.s32.f32 %v115_v32 }
 0x12b   :  { %119 = vmin.xlane.f32.xlu1 %v118_v31 }
 0x1b8   :  { %v120_v33 = vpop.xlane.xlu1 %119 }
 0x1b9   :  { %vm121_vm2 = vcmp.eq.f32.partialorder %v118_v31, %v120_v33  ;;  %v126_v36 = vcvt.f32.s32 %v120_v33 }
 0x1ba   :  { %v122_v35 = vsel %vm121_vm2, %v117_v34, inf }
 0x1bb   :  { %123 = vmin.xlane.f32.xlu1 %v122_v35  ;;  %v127_v38 = vshll.u32 %v126_v36, 16 }
 0x248   :  { %v124_v37 = vpop.xlane.xlu1 %123 }
 0x249   :  { %v125_v39 = vcvt.f32.s32 %v124_v37 }
 0x24b   :  { %v128_v40 = vadd.s32 %v127_v38, %v125_v39 }
 0x24d   :  { %v129_v41 = vrot.slane %v128_v40, 4 }
 0x24f   :  { %vm130_vm3 = vcmp.lt.s32.totalorder %v128_v40, %v129_v41 }
 0x250   :  { %v131_v42 = vsel %vm130_vm3, %v128_v40, %v129_v41 }
 0x251   :  { %v132_v43 = vrot.slane %v131_v42, 2 }
 0x253   :  { %vm133_vm4 = vcmp.lt.s32.totalorder %v131_v42, %v132_v43 }
 0x254   :  { %v134_v44 = vsel %vm133_vm4, %v131_v42, %v132_v43 }
 0x255   :  { %v135_v45 = vrot.slane %v134_v44, 1 }
 0x257   :  { %vm136_vm5 = vcmp.lt.s32.totalorder %v134_v44, %v135_v45 }
 0x258   :  { %v137_v46 = vsel %vm136_vm5, %v134_v44, %v135_v45 }
 0x259   :  { %543 = vpush %v137_v46 }
 0x28a   :  { %s544_s11 = spop %543 }
 0x28b   :  { %s143_s12 = sand.u32 1023, %s544_s11  ;;  %v159_v47 = vstv %s544_s11 }
 0x28c   :  { %s1001_s12 = smov (!%p568_p0, %s143_s12), 0  ;;  %vm160_vm6 = vcmp.eq.s32.totalorder %v109_v29, %v159_v47 }
 0x28d   :  { %v161_v48 = vsel %vm160_vm6, 2147483647, %v109_v29  ;;  %s533_s13 = sshll.u32 %s1001_s12, 1  ;;  %s149_s14 = sld [smem:[#allocation9 + %s1001_s12]] }
 0x28e   :  { %v163_v49 = vshra.s32 %v161_v48, 16  ;;  %s146_s15 = sld [smem:[#allocation10 + %s533_s13]]  ;;  %s147_s16 = sadd.s32 1, %s533_s13  ;;  %v162_v51 = vand.u32 65535, %v161_v48 }
 0x28f   :  { %s148_s17 = sld [smem:[#allocation10 + %s147_s16]] }
 0x290   :  { %v165_v50 = vcvt.s32.f32 %v163_v49  ;;  %v164_v53 = vcvt.s32.f32 %v162_v51 }
 0x292   :  { %166 = vmin.xlane.f32.xlu0 %v165_v50 }
 0x293   :  { %s1003_s14 = smov (!%p568_p0, %s149_s14), 0.0 }
 0x294   :  { %s1005_s15 = smov (!%p568_p0, %s146_s15), 0  ;;  %158 = sst [smem:[#allocation15]] %s1003_s14 }
 0x295   :  { %s1007_s17 = smov (!%p568_p0, %s148_s17), 0  ;;  %152 = sst [smem:[#allocation12]] %s1005_s15 }
 0x296   :  { %155 = sst [smem:[#allocation13]] %s1007_s17 }
 0x31f   :  { %v167_v52 = vpop.xlane.xlu0 %166 }
 0x320   :  { %vm168_vm7 = vcmp.eq.f32.partialorder %v165_v50, %v167_v52  ;;  %v173_v55 = vcvt.f32.s32 %v167_v52 }
 0x321   :  { %v169_v54 = vsel %vm168_vm7, %v164_v53, inf }
 0x322   :  { %170 = vmin.xlane.f32.xlu1 %v169_v54  ;;  %v174_v57 = vshll.u32 %v173_v55, 16 }
 0x3af   :  { %v171_v56 = vpop.xlane.xlu1 %170 }
 0x3b0   :  { %v172_v58 = vcvt.f32.s32 %v171_v56 }
 0x3b2   :  { %v175_v59 = vadd.s32 %v174_v57, %v172_v58 }
 0x3b4   :  { %v176_v60 = vrot.slane %v175_v59, 4 }
 0x3b6   :  { %vm177_vm8 = vcmp.lt.s32.totalorder %v175_v59, %v176_v60 }
 0x3b7   :  { %v178_v61 = vsel %vm177_vm8, %v175_v59, %v176_v60 }
 0x3b8   :  { %v179_v62 = vrot.slane %v178_v61, 2 }
 0x3ba   :  { %vm180_vm9 = vcmp.lt.s32.totalorder %v178_v61, %v179_v62 }
 0x3bb   :  { %v181_v63 = vsel %vm180_vm9, %v178_v61, %v179_v62 }
 0x3bc   :  { %v182_v0 = vrot.slane %v181_v63, 1 }
 0x3be   :  { %vm183_vm10 = vcmp.lt.s32.totalorder %v181_v63, %v182_v0 }
 0x3bf   :  { %v184_v1 = vsel %vm183_vm10, %v181_v63, %v182_v0 }
 0x3c0   :  { %545 = vpush %v184_v1 }
 0x3f1   :  { %s546_s18 = spop %545 }
 0x3f2   :  { %s189_s19 = sand.u32 1023, %s546_s18  ;;  %v205_v2 = vstv %s546_s18 }
 0x3f3   :  { %s1009_s19 = smov (!%p576_p1, %s189_s19), 0  ;;  %vm206_vm11 = vcmp.eq.s32.totalorder %v161_v48, %v205_v2 }
 0x3f4   :  { %v207_v3 = vsel %vm206_vm11, 2147483647, %v161_v48  ;;  %s534_s20 = sshll.u32 %s1009_s19, 1  ;;  %s195_s21 = sld [smem:[#allocation9 + %s1009_s19]] }
 0x3f5   :  { %v209_v4 = vshra.s32 %v207_v3, 16  ;;  %s192_s22 = sld [smem:[#allocation10 + %s534_s20]]  ;;  %s193_s0 = sadd.s32 1, %s534_s20  ;;  %v208_v6 = vand.u32 65535, %v207_v3 }
 0x3f6   :  { %s194_s23 = sld [smem:[#allocation10 + %s193_s0]] }
 0x3f7   :  { %v211_v5 = vcvt.s32.f32 %v209_v4  ;;  %v210_v8 = vcvt.s32.f32 %v208_v6 }
 0x3f9   :  { %212 = vmin.xlane.f32.xlu0 %v211_v5 }
 0x3fa   :  { %s1011_s21 = smov (!%p576_p1, %s195_s21), 0.0 }
 0x3fb   :  { %s1013_s22 = smov (!%p576_p1, %s192_s22), 0  ;;  %204 = sst [smem:[#allocation15 + $0x1]] %s1011_s21 }
 0x3fc   :  { %s1015_s23 = smov (!%p576_p1, %s194_s23), 0  ;;  %198 = sst [smem:[#allocation12 + $0x1]] %s1013_s22 }
 0x3fd   :  { %201 = sst [smem:[#allocation13 + $0x1]] %s1015_s23 }
 0x486   :  { %v213_v7 = vpop.xlane.xlu0 %212 }
 0x487   :  { %vm214_vm12 = vcmp.eq.f32.partialorder %v211_v5, %v213_v7  ;;  %v219_v10 = vcvt.f32.s32 %v213_v7 }
 0x488   :  { %v215_v9 = vsel %vm214_vm12, %v210_v8, inf }
 0x489   :  { %216 = vmin.xlane.f32.xlu1 %v215_v9  ;;  %v220_v12 = vshll.u32 %v219_v10, 16 }
 0x516   :  { %v217_v11 = vpop.xlane.xlu1 %216 }
 0x517   :  { %v218_v13 = vcvt.f32.s32 %v217_v11 }
 0x519   :  { %v221_v14 = vadd.s32 %v220_v12, %v218_v13 }
 0x51b   :  { %v222_v15 = vrot.slane %v221_v14, 4 }
 0x51d   :  { %vm223_vm13 = vcmp.lt.s32.totalorder %v221_v14, %v222_v15 }
 0x51e   :  { %v224_v16 = vsel %vm223_vm13, %v221_v14, %v222_v15 }
 0x51f   :  { %v225_v17 = vrot.slane %v224_v16, 2 }
 0x521   :  { %vm226_vm14 = vcmp.lt.s32.totalorder %v224_v16, %v225_v17 }
 0x522   :  { %v227_v18 = vsel %vm226_vm14, %v224_v16, %v225_v17 }
 0x523   :  { %v228_v19 = vrot.slane %v227_v18, 1 }
 0x525   :  { %vm229_vm15 = vcmp.lt.s32.totalorder %v227_v18, %v228_v19 }
 0x526   :  { %v230_v20 = vsel %vm229_vm15, %v227_v18, %v228_v19 }
 0x527   :  { %547 = vpush %v230_v20 }
 0x558   :  { %s548_s24 = spop %547 }
 0x559   :  { %s235_s25 = sand.u32 1023, %s548_s24  ;;  %v251_v21 = vstv %s548_s24 }
 0x55a   :  { %s1017_s25 = smov (!%p584_p2, %s235_s25), 0  ;;  %vm252_vm0 = vcmp.eq.s32.totalorder %v207_v3, %v251_v21 }
 0x55b   :  { %v253_v22 = vsel %vm252_vm0, 2147483647, %v207_v3  ;;  %s535_s26 = sshll.u32 %s1017_s25, 1  ;;  %s241_s28 = sld [smem:[#allocation9 + %s1017_s25]] }
 0x55c   :  { %v255_v23 = vshra.s32 %v253_v22, 16  ;;  %s238_s29 = sld [smem:[#allocation10 + %s535_s26]]  ;;  %s239_s30 = sadd.s32 1, %s535_s26  ;;  %v254_v25 = vand.u32 65535, %v253_v22 }
 0x55d   :  { %s240_s8 = sld [smem:[#allocation10 + %s239_s30]] }
 0x55e   :  { %v257_v24 = vcvt.s32.f32 %v255_v23  ;;  %v256_v27 = vcvt.s32.f32 %v254_v25 }
 0x560   :  { %258 = vmin.xlane.f32.xlu0 %v257_v24 }
 0x561   :  { %s1019_s28 = smov (!%p584_p2, %s241_s28), 0.0 }
 0x562   :  { %s1021_s29 = smov (!%p584_p2, %s238_s29), 0  ;;  %250 = sst [smem:[#allocation15 + $0x2]] %s1019_s28 }
 0x563   :  { %s1023_s8 = smov (!%p584_p2, %s240_s8), 0  ;;  %244 = sst [smem:[#allocation12 + $0x2]] %s1021_s29 }
 0x564   :  { %247 = sst [smem:[#allocation13 + $0x2]] %s1023_s8 }
 0x5ed   :  { %v259_v26 = vpop.xlane.xlu0 %258 }
 0x5ee   :  { %vm260_vm1 = vcmp.eq.f32.partialorder %v257_v24, %v259_v26  ;;  %v265_v29 = vcvt.f32.s32 %v259_v26 }
 0x5ef   :  { %v261_v28 = vsel %vm260_vm1, %v256_v27, inf }
 0x5f0   :  { %262 = vmin.xlane.f32.xlu1 %v261_v28  ;;  %v266_v31 = vshll.u32 %v265_v29, 16 }
 0x67d   :  { %v263_v30 = vpop.xlane.xlu1 %262 }
 0x67e   :  { %v264_v32 = vcvt.f32.s32 %v263_v30 }
 0x680   :  { %v267_v33 = vadd.s32 %v266_v31, %v264_v32 }
 0x682   :  { %v268_v34 = vrot.slane %v267_v33, 4 }
 0x684   :  { %vm269_vm2 = vcmp.lt.s32.totalorder %v267_v33, %v268_v34 }
 0x685   :  { %v270_v35 = vsel %vm269_vm2, %v267_v33, %v268_v34 }
 0x686   :  { %v271_v36 = vrot.slane %v270_v35, 2 }
 0x688   :  { %vm272_vm3 = vcmp.lt.s32.totalorder %v270_v35, %v271_v36 }
 0x689   :  { %v273_v37 = vsel %vm272_vm3, %v270_v35, %v271_v36 }
 0x68a   :  { %v274_v38 = vrot.slane %v273_v37, 1 }
 0x68c   :  { %vm275_vm4 = vcmp.lt.s32.totalorder %v273_v37, %v274_v38 }
 0x68d   :  { %v276_v39 = vsel %vm275_vm4, %v273_v37, %v274_v38 }
 0x68e   :  { %549 = vpush %v276_v39 }
 0x6bf   :  { %s550_s9 = spop %549 }
 0x6c0   :  { %s281_s1 = sand.u32 1023, %s550_s9  ;;  %v297_v40 = vstv %s550_s9 }
 0x6c1   :  { %s1025_s1 = smov (!%p592_p3, %s281_s1), 0  ;;  %vm298_vm5 = vcmp.eq.s32.totalorder %v253_v22, %v297_v40 }
 0x6c2   :  { %v299_v41 = vsel %vm298_vm5, 2147483647, %v253_v22  ;;  %s536_s2 = sshll.u32 %s1025_s1, 1  ;;  %s287_s27 = sld [smem:[#allocation9 + %s1025_s1]] }
 0x6c3   :  { %v301_v42 = vshra.s32 %v299_v41, 16  ;;  %s284_s10 = sld [smem:[#allocation10 + %s536_s2]]  ;;  %s285_s11 = sadd.s32 1, %s536_s2  ;;  %v300_v44 = vand.u32 65535, %v299_v41 }
 0x6c4   :  { %s286_s12 = sld [smem:[#allocation10 + %s285_s11]] }
 0x6c5   :  { %v303_v43 = vcvt.s32.f32 %v301_v42  ;;  %v302_v46 = vcvt.s32.f32 %v300_v44 }
 0x6c7   :  { %304 = vmin.xlane.f32.xlu0 %v303_v43 }
 0x6c8   :  { %s1027_s27 = smov (!%p592_p3, %s287_s27), 0.0 }
 0x6c9   :  { %s1029_s10 = smov (!%p592_p3, %s284_s10), 0  ;;  %296 = sst [smem:[#allocation15 + $0x3]] %s1027_s27 }
 0x6ca   :  { %s1031_s12 = smov (!%p592_p3, %s286_s12), 0  ;;  %290 = sst [smem:[#allocation12 + $0x3]] %s1029_s10 }
 0x6cb   :  { %293 = sst [smem:[#allocation13 + $0x3]] %s1031_s12  ;;  %s700_s10 = scalar_lea.hbm %s999_s7, 16 }
 0x6cc   :  { %p701_p7 = scmp.ne.s32.totalorder %s999_s7, %s700_s10  ;;  %p704_p8 = scmp.lt.u32.totalorder %s700_s10, %s999_s7 }
 0x6ce   :  { %p706_p9 = pnand %p704_p8, %p701_p7 }
 0x754   :  { %v305_v45 = vpop.xlane.xlu0 %304 }
 0x755   :  { %vm306_vm6 = vcmp.eq.f32.partialorder %v303_v43, %v305_v45  ;;  %v311_v48 = vcvt.f32.s32 %v305_v45 }
 0x756   :  { %v307_v47 = vsel %vm306_vm6, %v302_v46, inf }
 0x757   :  { %308 = vmin.xlane.f32.xlu1 %v307_v47  ;;  %v312_v50 = vshll.u32 %v311_v48, 16 }
 0x7e4   :  { %v309_v49 = vpop.xlane.xlu1 %308 }
 0x7e5   :  { %v310_v51 = vcvt.f32.s32 %v309_v49 }
 0x7e7   :  { %v313_v52 = vadd.s32 %v312_v50, %v310_v51 }
 0x7e9   :  { %v314_v53 = vrot.slane %v313_v52, 4 }
 0x7eb   :  { %vm315_vm7 = vcmp.lt.s32.totalorder %v313_v52, %v314_v53 }
 0x7ec   :  { %v316_v54 = vsel %vm315_vm7, %v313_v52, %v314_v53 }
 0x7ed   :  { %v317_v55 = vrot.slane %v316_v54, 2 }
 0x7ef   :  { %vm318_vm8 = vcmp.lt.s32.totalorder %v316_v54, %v317_v55 }
 0x7f0   :  { %v319_v56 = vsel %vm318_vm8, %v316_v54, %v317_v55 }
 0x7f1   :  { %v320_v57 = vrot.slane %v319_v56, 1 }
 0x7f3   :  { %vm321_vm9 = vcmp.lt.s32.totalorder %v319_v56, %v320_v57 }
 0x7f4   :  { %v322_v58 = vsel %vm321_vm9, %v319_v56, %v320_v57 }
 0x7f5   :  { %551 = vpush %v322_v58 }
 0x826   :  { %s552_s13 = spop %551 }
 0x827   :  { %s327_s14 = sand.u32 1023, %s552_s13  ;;  %v343_v59 = vstv %s552_s13 }
 0x828   :  { %s1033_s14 = smov (!%p600_p4, %s327_s14), 0  ;;  %vm344_vm10 = vcmp.eq.s32.totalorder %v299_v41, %v343_v59 }
 0x829   :  { %v345_v60 = vsel %vm344_vm10, 2147483647, %v299_v41  ;;  %s537_s15 = sshll.u32 %s1033_s14, 1  ;;  %s333_s16 = sld [smem:[#allocation9 + %s1033_s14]] }
 0x82a   :  { %v347_v61 = vshra.s32 %v345_v60, 16  ;;  %s330_s17 = sld [smem:[#allocation10 + %s537_s15]]  ;;  %s331_s18 = sadd.s32 1, %s537_s15  ;;  %v346_v63 = vand.u32 65535, %v345_v60 }
 0x82b   :  { %s332_s19 = sld [smem:[#allocation10 + %s331_s18]] }
 0x82c   :  { %v349_v62 = vcvt.s32.f32 %v347_v61  ;;  %v348_v1 = vcvt.s32.f32 %v346_v63 }
 0x82e   :  { %350 = vmin.xlane.f32.xlu0 %v349_v62 }
 0x82f   :  { %s1035_s16 = smov (!%p600_p4, %s333_s16), 0.0 }
 0x830   :  { %s1037_s17 = smov (!%p600_p4, %s330_s17), 0  ;;  %342 = sst [smem:[#allocation15 + $0x4]] %s1035_s16 }
 0x831   :  { %s1039_s19 = smov (!%p600_p4, %s332_s19), 0  ;;  %336 = sst [smem:[#allocation12 + $0x4]] %s1037_s17 }
 0x832   :  { %339 = sst [smem:[#allocation13 + $0x4]] %s1039_s19 }
 0x8bb   :  { %v351_v0 = vpop.xlane.xlu0 %350 }
 0x8bc   :  { %vm352_vm11 = vcmp.eq.f32.partialorder %v349_v62, %v351_v0  ;;  %v357_v3 = vcvt.f32.s32 %v351_v0 }
 0x8bd   :  { %v353_v2 = vsel %vm352_vm11, %v348_v1, inf }
 0x8be   :  { %354 = vmin.xlane.f32.xlu1 %v353_v2  ;;  %v358_v5 = vshll.u32 %v357_v3, 16 }
 0x94b   :  { %v355_v4 = vpop.xlane.xlu1 %354 }
 0x94c   :  { %v356_v6 = vcvt.f32.s32 %v355_v4 }
 0x94e   :  { %v359_v7 = vadd.s32 %v358_v5, %v356_v6 }
 0x950   :  { %v360_v8 = vrot.slane %v359_v7, 4 }
 0x952   :  { %vm361_vm12 = vcmp.lt.s32.totalorder %v359_v7, %v360_v8 }
 0x953   :  { %v362_v9 = vsel %vm361_vm12, %v359_v7, %v360_v8 }
 0x954   :  { %v363_v10 = vrot.slane %v362_v9, 2 }
 0x956   :  { %vm364_vm13 = vcmp.lt.s32.totalorder %v362_v9, %v363_v10 }
 0x957   :  { %v365_v11 = vsel %vm364_vm13, %v362_v9, %v363_v10 }
 0x958   :  { %v366_v12 = vrot.slane %v365_v11, 1 }
 0x95a   :  { %vm367_vm14 = vcmp.lt.s32.totalorder %v365_v11, %v366_v12 }
 0x95b   :  { %v368_v13 = vsel %vm367_vm14, %v365_v11, %v366_v12 }
 0x95c   :  { %553 = vpush %v368_v13 }
 0x98d   :  { %s554_s20 = spop %553 }
 0x98e   :  { %s373_s21 = sand.u32 1023, %s554_s20  ;;  %v389_v14 = vstv %s554_s20 }
 0x98f   :  { %s1041_s21 = smov (!%p608_p5, %s373_s21), 0  ;;  %vm390_vm15 = vcmp.eq.s32.totalorder %v345_v60, %v389_v14 }
 0x990   :  { %v391_v15 = vsel %vm390_vm15, 2147483647, %v345_v60  ;;  %s538_s22 = sshll.u32 %s1041_s21, 1  ;;  %s379_s0 = sld [smem:[#allocation9 + %s1041_s21]] }
 0x991   :  { %v393_v16 = vshra.s32 %v391_v15, 16  ;;  %s376_s23 = sld [smem:[#allocation10 + %s538_s22]]  ;;  %s377_s24 = sadd.s32 1, %s538_s22  ;;  %v392_v18 = vand.u32 65535, %v391_v15 }
 0x992   :  { %s378_s25 = sld [smem:[#allocation10 + %s377_s24]] }
 0x993   :  { %v395_v17 = vcvt.s32.f32 %v393_v16  ;;  %v394_v20 = vcvt.s32.f32 %v392_v18 }
 0x995   :  { %396 = vmin.xlane.f32.xlu0 %v395_v17 }
 0x996   :  { %s1043_s0 = smov (!%p608_p5, %s379_s0), 0.0 }
 0x997   :  { %s1045_s23 = smov (!%p608_p5, %s376_s23), 0  ;;  %388 = sst [smem:[#allocation15 + $0x5]] %s1043_s0 }
 0x998   :  { %s1047_s25 = smov (!%p608_p5, %s378_s25), 0  ;;  %382 = sst [smem:[#allocation12 + $0x5]] %s1045_s23 }
 0x999   :  { %385 = sst [smem:[#allocation13 + $0x5]] %s1047_s25 }
 0xa22   :  { %v397_v19 = vpop.xlane.xlu0 %396 }
 0xa23   :  { %vm398_vm0 = vcmp.eq.f32.partialorder %v395_v17, %v397_v19  ;;  %v403_v22 = vcvt.f32.s32 %v397_v19 }
 0xa24   :  { %v399_v21 = vsel %vm398_vm0, %v394_v20, inf }
 0xa25   :  { %400 = vmin.xlane.f32.xlu1 %v399_v21  ;;  %v404_v24 = vshll.u32 %v403_v22, 16 }
 0xab2   :  { %v401_v23 = vpop.xlane.xlu1 %400 }
 0xab3   :  { %v402_v25 = vcvt.f32.s32 %v401_v23 }
 0xab5   :  { %v405_v26 = vadd.s32 %v404_v24, %v402_v25 }
 0xab7   :  { %v406_v27 = vrot.slane %v405_v26, 4 }
 0xab9   :  { %vm407_vm1 = vcmp.lt.s32.totalorder %v405_v26, %v406_v27 }
 0xaba   :  { %v408_v28 = vsel %vm407_vm1, %v405_v26, %v406_v27 }
 0xabb   :  { %v409_v29 = vrot.slane %v408_v28, 2 }
 0xabd   :  { %vm410_vm2 = vcmp.lt.s32.totalorder %v408_v28, %v409_v29 }
 0xabe   :  { %v411_v30 = vsel %vm410_vm2, %v408_v28, %v409_v29 }
 0xabf   :  { %v412_v31 = vrot.slane %v411_v30, 1 }
 0xac1   :  { %vm413_vm3 = vcmp.lt.s32.totalorder %v411_v30, %v412_v31 }
 0xac2   :  { %v414_v32 = vsel %vm413_vm3, %v411_v30, %v412_v31 }
 0xac3   :  { %555 = vpush %v414_v32 }
 0xaf4   :  { %s556_s26 = spop %555 }
 0xaf5   :  { %s419_s28 = sand.u32 1023, %s556_s26  ;;  %v435_v33 = vstv %s556_s26 }
 0xaf6   :  { %s1049_s28 = smov (!%p616_p6, %s419_s28), 0  ;;  %vm436_vm4 = vcmp.eq.s32.totalorder %v391_v15, %v435_v33 }
 0xaf7   :  { %v437_v34 = vsel %vm436_vm4, 2147483647, %v391_v15  ;;  %s539_s29 = sshll.u32 %s1049_s28, 1  ;;  %s425_s30 = sld [smem:[#allocation9 + %s1049_s28]] }
 0xaf8   :  { %v439_v35 = vshra.s32 %v437_v34, 16  ;;  %s422_s8 = sld [smem:[#allocation10 + %s539_s29]]  ;;  %s423_s9 = sadd.s32 1, %s539_s29  ;;  %v438_v37 = vand.u32 65535, %v437_v34 }
 0xaf9   :  { %s424_s1 = sld [smem:[#allocation10 + %s423_s9]] }
 0xafa   :  { %v441_v36 = vcvt.s32.f32 %v439_v35  ;;  %v440_v39 = vcvt.s32.f32 %v438_v37 }
 0xafc   :  { %442 = vmin.xlane.f32.xlu0 %v441_v36 }
 0xafd   :  { %s1051_s30 = smov (!%p616_p6, %s425_s30), 0.0 }
 0xafe   :  { %s1053_s8 = smov (!%p616_p6, %s422_s8), 0  ;;  %434 = sst [smem:[#allocation15 + $0x6]] %s1051_s30 }
 0xaff   :  { %s1055_s1 = smov (!%p616_p6, %s424_s1), 0  ;;  %428 = sst [smem:[#allocation12 + $0x6]] %s1053_s8 }
 0xb00   :  { %431 = sst [smem:[#allocation13 + $0x6]] %s1055_s1 }
 0xb89   :  { %v443_v38 = vpop.xlane.xlu0 %442 }
 0xb8a   :  { %vm444_vm5 = vcmp.eq.f32.partialorder %v441_v36, %v443_v38 }
 0xb8b   :  { %v445_v40 = vsel %vm444_vm5, %v440_v39, inf }
 0xb8c   :  { %446 = vmin.xlane.f32.xlu1 %v445_v40 }
 0xb8d   :  { %709 = shalt.err (!%p706_p9)
}
 0xb8e   :  { %s799_s15 = smov [#allocation16]   ;;  %v449_v41 = vcvt.f32.s32 %v443_v38  ;;  %p624_p10 = scmp.gt.s32.totalorder %s874_s3, 7 }
 0xb8f   :  { %512 = dma.smem_to_hbm %s799_s15, 16, %s999_s7, [#allocation17]  }
 0xb90   :  { %v450_v43 = vshll.u32 %v449_v41, 16  ;;  %s710_s25 = scalar_lea.hbm %s997_s5, 16 }
 0xb91   :  { %p711_p11 = scmp.ne.s32.totalorder %s997_s5, %s710_s25  ;;  %p714_p12 = scmp.lt.u32.totalorder %s710_s25, %s997_s5 }
 0xb93   :  { %p716_p13 = pnand %p714_p12, %p711_p11 }
 0xc19   :  { %v447_v42 = vpop.xlane.xlu1 %446 }
 0xc1a   :  { %v448_v44 = vcvt.f32.s32 %v447_v42 }
 0xc1c   :  { %v451_v45 = vadd.s32 %v450_v43, %v448_v44 }
 0xc1e   :  { %v452_v46 = vrot.slane %v451_v45, 4 }
 0xc20   :  { %vm453_vm6 = vcmp.lt.s32.totalorder %v451_v45, %v452_v46 }
 0xc21   :  { %v454_v47 = vsel %vm453_vm6, %v451_v45, %v452_v46 }
 0xc22   :  { %v455_v48 = vrot.slane %v454_v47, 2 }
 0xc24   :  { %vm456_vm7 = vcmp.lt.s32.totalorder %v454_v47, %v455_v48 }
 0xc25   :  { %v457_v49 = vsel %vm456_vm7, %v454_v47, %v455_v48 }
 0xc26   :  { %v458_v50 = vrot.slane %v457_v49, 1 }
 0xc28   :  { %vm459_vm8 = vcmp.lt.s32.totalorder %v457_v49, %v458_v50 }
 0xc29   :  { %v460_v51 = vsel %vm459_vm8, %v457_v49, %v458_v50 }
 0xc2a   :  { %557 = vpush %v460_v51 }
 0xc5b   :  { %s558_s18 = spop %557 }
 0xc5c   :  { %s465_s19 = sand.u32 1023, %s558_s18 }
 0xc5d   :  { %s1057_s19 = smov (!%p624_p10, %s465_s19), 0 }
 0xc5e   :  { %s540_s7 = sshll.u32 %s1057_s19, 1  ;;  %s471_s20 = sld [smem:[#allocation9 + %s1057_s19]] }
 0xc5f   :  { %s468_s21 = sld [smem:[#allocation10 + %s540_s7]]  ;;  %s469_s22 = sadd.s32 1, %s540_s7 }
 0xc60   :  { %s470_s0 = sld [smem:[#allocation10 + %s469_s22]] }
 0xc64   :  { %s1059_s20 = smov (!%p624_p10, %s471_s20), 0.0 }
 0xc65   :  { %s1061_s21 = smov (!%p624_p10, %s468_s21), 0  ;;  %480 = sst [smem:[#allocation15 + $0x7]] %s1059_s20 }
 0xc66   :  { %s1063_s0 = smov (!%p624_p10, %s470_s0), 0  ;;  %474 = sst [smem:[#allocation12 + $0x7]] %s1061_s21 }
 0xc67   :  { %477 = sst [smem:[#allocation13 + $0x7]] %s1063_s0 }
 0xc68   :  { %719 = shalt.err (!%p716_p13)
}
 0xc69   :  { %s800_s30 = smov [#allocation13]   ;;  %s720_s27 = scalar_lea.hbm %s996_s4, 16 }
 0xc6a   :  { %496 = dma.smem_to_hbm %s800_s30, 16, %s997_s5, [#allocation14]  }
 0xc6b   :  { %p721_p0 = scmp.ne.s32.totalorder %s996_s4, %s720_s27  ;;  %p724_p1 = scmp.lt.u32.totalorder %s720_s27, %s996_s4 }
 0xc6d   :  { %p726_p2 = pnand %p724_p1, %p721_p0 }
 0xc6f   :  { %729 = shalt.err (!%p726_p2)
}
 0xc70   :  { %s801_s14 = smov [#allocation12]   ;;  %s730_s18 = scalar_lea.hbm %s998_s6, 16 }
 0xc71   :  { %488 = dma.smem_to_hbm %s801_s14, 16, %s996_s4, [#allocation5]  }
 0xc72   :  { %p731_p3 = scmp.ne.s32.totalorder %s998_s6, %s730_s18  ;;  %p734_p4 = scmp.lt.u32.totalorder %s730_s18, %s998_s6 }
 0xc74   :  { %p736_p5 = pnand %p734_p4, %p731_p3 }
 0xc76   :  { %739 = shalt.err (!%p736_p5)
}
 0xc77   :  { %s802_s22 = smov [#allocation15]  }
 0xc78   :  { %504 = dma.smem_to_hbm %s802_s22, 16, %s998_s6, [#allocation14]  }
 0xc79   :  { %748 = dma.done.wait [#allocation5], 16  }
 0xc7a   :  { %749 = vsyncadd [#allocation5], 4294967280 }
 0xc7b   :  { %750 = dma.done.wait [#allocation14], 32  }
 0xc7c   :  { %751 = vsyncadd [#allocation14], 4294967264 }
 0xc7d   :  { %752 = dma.done.wait [#allocation17], 16  }
 0xc7e   :  { %753 = vsyncadd [#allocation17], 4294967280 }
 0xc7f   :  { %525 = sfence }
 0xc80   :  { %526 = vsyncpa [#allocation4], 1 }
 0xc81   :  { %527 = vsyncpa [#allocation8], 1 }
 0xc82   :  { %528 = vsyncpa [#allocation5], 1 }
 0xc83   :  { %529 = vsyncpa [#allocation14], 1 }
 0xc84   :  { %530 = vsyncpa [#allocation17], 1 }
 0xc85   :  { %531 = vsyncpa [#allocation6], 1 }
 0xc86   :  { %532 = vsyncpa [#allocation11], 1 }

</bundles_post_ra>
